<compile_context>
chip_gen: v5e
topology: v5e:2x2
jax: 0.10.0
libtpu: 0.0.40
codegen_flags: <defaults>
</compile_context>

<pallas_src>
import functools

import jax
import jax.numpy as jnp
from jax.experimental import pallas as pl
from jax.experimental.pallas import tpu as pltpu

FC1, FC2, FC3, FC4 = 50, 100, 100, 50
LN_EPS = 1e-5            # torch.nn.LayerNorm default
LANE = 128
SUBLANE = 8
BF16_SUBLANE = 16        # bf16 sublane tile (rows) for the packed weights
GRIDLESS_MAX_ROWS = 64   # below this, a grid-less single call is fastest
BATCH_TILE = 256         # batch tile when gridding (feeds both v7x TCs)


def _round_up(x, m):
    return (x + m - 1) // m * m


def _w_layout(state_size):
    """Row layout of the packed bf16 weight buffer.

    The state block is shrunk to round_up(S, 16) rows; hidden blocks keep
    128 rows (their pad rows are zero) so the [B,128] activations feed the
    next dot without any lane slicing / relayout."""
    rows = [_round_up(state_size, BF16_SUBLANE)] + [LANE] * 4
    offsets = [0]
    for r in rows[:-1]:
        offsets.append(offsets[-1] + r)
    return tuple(rows), tuple(offsets)


def actor_kernel(x_ref, w_ref, v_ref, mu_ref, *, out_dims, w_rows, w_offsets):
    """Fused Actor MLP.

    x_ref:  [TB, Sp] f32 (state, zero lane-padded to Sp = round_up(S,16))
    w_ref:  packed bf16 weights, blocks of w_rows[i] x 128 at w_offsets[i]
    v_ref:  [40, 128] f32; layer i's bias/gamma/beta at rows 8i, 8i+1, 8i+2
    mu_ref: [TB, 128] f32 (logical mu in the first action_size lanes)."""
    h = x_ref[...]
    for i in range(5):
        d = out_dims[i]                                        # logical width
        w = w_ref[w_offsets[i]:w_offsets[i] + w_rows[i], :]    # bf16 block
        y = jnp.dot(h.astype(jnp.bfloat16), w,
                    preferred_element_type=jnp.float32)        # [TB, 128] f32
        r = SUBLANE * i
        y = y + v_ref[r:r + 1, :]                              # pad lanes stay 0
        g = v_ref[r + 1:r + 2, :]
        beta = v_ref[r + 2:r + 3, :]
        # LayerNorm over the logical width d (biased variance, like torch).
        # Pad lanes of y are exact zeros, so both sums are exact; the two
        # reductions are independent (shorter critical path than centered form).
        inv_d = 1.0 / d
        s1 = jnp.sum(y, axis=-1, keepdims=True)
        s2 = jnp.sum(y * y, axis=-1, keepdims=True)
        mean = s1 * inv_d
        var = s2 * inv_d - mean * mean
        y_hat = (y - mean) * jax.lax.rsqrt(var + LN_EPS)
        y_hat = y_hat * g + beta                               # pad lanes -> 0
        h = jnp.maximum(y_hat, 0.0) if i < 4 else jnp.tanh(y_hat)
    mu_ref[...] = h.astype(mu_ref.dtype)


def init_actor_params(state_size, action_size, seed=0, std=0.0):
    """Mirrors init_weights(): Linear W ~ U(+-sqrt(6/(fan_in+fan_out))),
    biases 0, LayerNorm gamma 1 / beta 0 (torch default), log_std = std.
    Weights are stored pre-transposed as [in, out]."""
    key = jax.random.PRNGKey(seed)
    dims = [state_size, FC1, FC2, FC3, FC4, action_size]
    params = {}
    for i in range(5):
        fan_in, fan_out = dims[i], dims[i + 1]
        key, sub = jax.random.split(key)
        bound = float(jnp.sqrt(6.0 / (fan_in + fan_out)))
        params[f"w{i+1}"] = jax.random.uniform(
            sub, (fan_in, fan_out), jnp.float32, minval=-bound, maxval=bound)
        params[f"b{i+1}"] = jnp.zeros((fan_out,), jnp.float32)
        params[f"g{i+1}"] = jnp.ones((fan_out,), jnp.float32)
        params[f"beta{i+1}"] = jnp.zeros((fan_out,), jnp.float32)
    params["log_std"] = jnp.full((1, action_size), std, jnp.float32)
    return params


def pack_actor_params(params, state_size, action_size):
    """Pack 20 small tensors into 2 kernel operands; precompute std."""
    dims = [state_size, FC1, FC2, FC3, FC4, action_size]
    assert max(dims[1:]) <= LANE, "hidden/action widths must be <= 128"
    w_rows, w_offsets = _w_layout(state_size)
    total_rows = w_offsets[-1] + w_rows[-1]

    w_packed = jnp.zeros((total_rows, LANE), jnp.bfloat16)
    v_packed = jnp.zeros((5 * SUBLANE, LANE), jnp.float32)
    for i in range(5):
        fan_in, fan_out = dims[i], dims[i + 1]
        w_packed = w_packed.at[
            w_offsets[i]:w_offsets[i] + fan_in, :fan_out
        ].set(params[f"w{i+1}"].astype(jnp.bfloat16))
        r = SUBLANE * i                       # tile-aligned per-layer rows
        v_packed = v_packed.at[r, :fan_out].set(params[f"b{i+1}"])
        v_packed = v_packed.at[r + 1, :fan_out].set(params[f"g{i+1}"])
        v_packed = v_packed.at[r + 2, :fan_out].set(params[f"beta{i+1}"])
    return {"w_packed": w_packed, "v_packed": v_packed,
            "std": jnp.exp(params["log_std"])}


@jax.jit
def actor_forward(state, packed):
    """Returns (mu, std) parameterizing Normal(mu, std), matching
    Actor.forward (mu = fc5(...).unsqueeze_(0), std = log_std.exp())."""
    B, S = state.shape
    A = packed["std"].shape[1]
    dims = (S, FC1, FC2, FC3, FC4, A)
    w_rows, w_offsets = _w_layout(S)
    Sp = w_rows[0]

    Bp = _round_up(B, SUBLANE)
    if Bp <= GRIDLESS_MAX_ROWS:
        tb = Bp                                   # single grid-less call
    else:
        tb = min(Bp, BATCH_TILE)
        Bp = _round_up(Bp, tb)

    x = state if state.dtype == jnp.float32 else state.astype(jnp.float32)
    if (Bp, Sp) != (B, S):
        x = jnp.zeros((Bp, Sp), jnp.float32).at[:B, :S].set(x)

    kernel = functools.partial(
        actor_kernel, out_dims=dims[1:], w_rows=w_rows, w_offsets=w_offsets)
    out_shape = jax.ShapeDtypeStruct((Bp, LANE), jnp.float32)

    if Bp == tb:
        vmem = pl.BlockSpec(memory_space=pltpu.MemorySpace.VMEM)
        mu_pad = pl.pallas_call(
            kernel, out_shape=out_shape,
            in_specs=[vmem, vmem, vmem], out_specs=vmem,
        )(x, packed["w_packed"], packed["v_packed"])
    else:
        wr = packed["w_packed"].shape[0]
        vr = packed["v_packed"].shape[0]
        mu_pad = pl.pallas_call(
            kernel, out_shape=out_shape,
            grid_spec=pltpu.PrefetchScalarGridSpec(
                num_scalar_prefetch=0, grid=(Bp // tb,),
                in_specs=[pl.BlockSpec((tb, Sp), lambda i: (i, 0)),
                          pl.BlockSpec((wr, LANE), lambda i: (0, 0)),
                          pl.BlockSpec((vr, LANE), lambda i: (0, 0))],
                out_specs=pl.BlockSpec((tb, LANE), lambda i: (i, 0))),
            compiler_params=pltpu.CompilerParams(
                dimension_semantics=("parallel",)),
        )(x, packed["w_packed"], packed["v_packed"])

    mu = mu_pad[:B, :A][None, :, :]                      # unsqueeze_(0)
    std = jnp.broadcast_to(packed["std"][None, :, :], mu.shape)
    return mu, std


def actor_reference(state, params):
    """Pure-JAX f32 reference of the torch forward (for correctness check)."""
    h = state.astype(jnp.float32)
    for i in range(5):
        y = h @ params[f"w{i+1}"] + params[f"b{i+1}"]
        mean = jnp.mean(y, axis=-1, keepdims=True)
        var = jnp.mean((y - mean) ** 2, axis=-1, keepdims=True)
        y = (y - mean) * jax.lax.rsqrt(var + LN_EPS)
        y = y * params[f"g{i+1}"] + params[f"beta{i+1}"]
        h = jnp.maximum(y, 0.0) if i < 4 else jnp.tanh(y)
    return h


if __name__ == "__main__":
    state_size = 16
    action_size = 4
    batch = 8

    params = init_actor_params(state_size, action_size, seed=0, std=0.0)
    packed = pack_actor_params(params, state_size, action_size)

    key = jax.random.PRNGKey(0)
    state = jax.random.normal(key, (batch, state_size), jnp.float32)

    mu, std = actor_forward(state, packed)
    jax.block_until_ready((mu, std))

    assert mu.shape == (1, batch, action_size)
    assert std.shape == (1, batch, action_size)
    assert bool(jnp.all(jnp.isfinite(mu)))

    ref = actor_reference(state, params)
    max_err = float(jnp.max(jnp.abs(mu[0] - ref)))
    assert max_err < 5e-2, f"mismatch vs f32 reference: {max_err}"
    assert bool(jnp.allclose(std, jnp.exp(params["log_std"])[None]))

    print("KERNEL_OK")
</pallas_src>

<mosaic_0001>
module attributes {stable_mosaic.version = 11 : i64} {
  func.func @actor_kernel(%arg0: memref<8x16xf32, #tpu.memory_space<vmem>>, %arg1: memref<528x128xbf16, #tpu.memory_space<vmem>>, %arg2: memref<40x128xf32, #tpu.memory_space<vmem>>, %arg3: memref<8x128xf32, #tpu.memory_space<vmem>>) attributes {dimension_semantics = [], scalar_prefetch = 0 : i64, scratch_operands = 0 : i64, tpu.core_type = #tpu.core_type<tc>} {
    %c0 = arith.constant 0 : index
    %c0_0 = arith.constant 0 : index
    %0 = vector.load %arg0[%c0, %c0_0] : memref<8x16xf32, #tpu.memory_space<vmem>>, vector<8x16xf32>
    %c0_1 = arith.constant 0 : index
    %c0_2 = arith.constant 0 : index
    %1 = vector.load %arg1[%c0_1, %c0_2] : memref<528x128xbf16, #tpu.memory_space<vmem>>, vector<16x128xbf16>
    %2 = arith.truncf %0 : vector<8x16xf32> to vector<8x16xbf16>
    %cst = arith.constant dense<0.000000e+00> : vector<8x128xf32>
    %3 = tpu.matmul %2, %1, %cst {dimension_numbers = #tpu.dot_dimension_numbers<[1], [0], [0], [1], [0, 0, 1, 1], [], []>} : vector<8x16xbf16>, vector<16x128xbf16>, vector<8x128xf32> -> vector<8x128xf32>
    %c0_3 = arith.constant 0 : index
    %c0_4 = arith.constant 0 : index
    %4 = vector.load %arg2[%c0_3, %c0_4] : memref<40x128xf32, #tpu.memory_space<vmem>>, vector<1x128xf32>
    %5 = vector.broadcast %4 : vector<1x128xf32> to vector<8x128xf32>
    %6 = arith.addf %3, %5 : vector<8x128xf32>
    %c1 = arith.constant 1 : index
    %c0_5 = arith.constant 0 : index
    %7 = vector.load %arg2[%c1, %c0_5] : memref<40x128xf32, #tpu.memory_space<vmem>>, vector<1x128xf32>
    %c2 = arith.constant 2 : index
    %c0_6 = arith.constant 0 : index
    %8 = vector.load %arg2[%c2, %c0_6] : memref<40x128xf32, #tpu.memory_space<vmem>>, vector<1x128xf32>
    %cst_7 = arith.constant dense<0.000000e+00> : vector<8xf32>
    %9 = vector.multi_reduction <add>, %6, %cst_7 [1] : vector<8x128xf32> to vector<8xf32>
    %10 = vector.shape_cast %9 : vector<8xf32> to vector<8x1xf32>
    %11 = arith.mulf %6, %6 : vector<8x128xf32>
    %cst_8 = arith.constant dense<0.000000e+00> : vector<8xf32>
    %12 = vector.multi_reduction <add>, %11, %cst_8 [1] : vector<8x128xf32> to vector<8xf32>
    %13 = vector.shape_cast %12 : vector<8xf32> to vector<8x1xf32>
    %cst_9 = arith.constant 2.000000e-02 : f32
    %14 = vector.broadcast %cst_9 : f32 to vector<8x1xf32>
    %15 = arith.mulf %10, %14 : vector<8x1xf32>
    %cst_10 = arith.constant 2.000000e-02 : f32
    %16 = vector.broadcast %cst_10 : f32 to vector<8x1xf32>
    %17 = arith.mulf %13, %16 : vector<8x1xf32>
    %18 = arith.mulf %15, %15 : vector<8x1xf32>
    %19 = arith.subf %17, %18 : vector<8x1xf32>
    %20 = vector.broadcast %15 : vector<8x1xf32> to vector<8x128xf32>
    %21 = arith.subf %6, %20 : vector<8x128xf32>
    %cst_11 = arith.constant 9.99999974E-6 : f32
    %22 = vector.broadcast %cst_11 : f32 to vector<8x1xf32>
    %23 = arith.addf %19, %22 : vector<8x1xf32>
    %24 = math.rsqrt %23 : vector<8x1xf32>
    %25 = vector.broadcast %24 : vector<8x1xf32> to vector<8x128xf32>
    %26 = arith.mulf %21, %25 : vector<8x128xf32>
    %27 = vector.broadcast %7 : vector<1x128xf32> to vector<8x128xf32>
    %28 = arith.mulf %26, %27 : vector<8x128xf32>
    %29 = vector.broadcast %8 : vector<1x128xf32> to vector<8x128xf32>
    %30 = arith.addf %28, %29 : vector<8x128xf32>
    %cst_12 = arith.constant 0.000000e+00 : f32
    %31 = vector.broadcast %cst_12 : f32 to vector<8x128xf32>
    %32 = arith.maximumf %30, %31 : vector<8x128xf32>
    %c16 = arith.constant 16 : index
    %c0_13 = arith.constant 0 : index
    %33 = vector.load %arg1[%c16, %c0_13] : memref<528x128xbf16, #tpu.memory_space<vmem>>, vector<128x128xbf16>
    %34 = arith.truncf %32 : vector<8x128xf32> to vector<8x128xbf16>
    %cst_14 = arith.constant dense<0.000000e+00> : vector<8x128xf32>
    %35 = tpu.matmul %34, %33, %cst_14 {dimension_numbers = #tpu.dot_dimension_numbers<[1], [0], [0], [1], [0, 0, 1, 1], [], []>} : vector<8x128xbf16>, vector<128x128xbf16>, vector<8x128xf32> -> vector<8x128xf32>
    %c8 = arith.constant 8 : index
    %c0_15 = arith.constant 0 : index
    %36 = vector.load %arg2[%c8, %c0_15] : memref<40x128xf32, #tpu.memory_space<vmem>>, vector<1x128xf32>
    %37 = vector.broadcast %36 : vector<1x128xf32> to vector<8x128xf32>
    %38 = arith.addf %35, %37 : vector<8x128xf32>
    %c9 = arith.constant 9 : index
    %c0_16 = arith.constant 0 : index
    %39 = vector.load %arg2[%c9, %c0_16] : memref<40x128xf32, #tpu.memory_space<vmem>>, vector<1x128xf32>
    %c10 = arith.constant 10 : index
    %c0_17 = arith.constant 0 : index
    %40 = vector.load %arg2[%c10, %c0_17] : memref<40x128xf32, #tpu.memory_space<vmem>>, vector<1x128xf32>
    %cst_18 = arith.constant dense<0.000000e+00> : vector<8xf32>
    %41 = vector.multi_reduction <add>, %38, %cst_18 [1] : vector<8x128xf32> to vector<8xf32>
    %42 = vector.shape_cast %41 : vector<8xf32> to vector<8x1xf32>
    %43 = arith.mulf %38, %38 : vector<8x128xf32>
    %cst_19 = arith.constant dense<0.000000e+00> : vector<8xf32>
    %44 = vector.multi_reduction <add>, %43, %cst_19 [1] : vector<8x128xf32> to vector<8xf32>
    %45 = vector.shape_cast %44 : vector<8xf32> to vector<8x1xf32>
    %cst_20 = arith.constant 0.00999999977 : f32
    %46 = vector.broadcast %cst_20 : f32 to vector<8x1xf32>
    %47 = arith.mulf %42, %46 : vector<8x1xf32>
    %cst_21 = arith.constant 0.00999999977 : f32
    %48 = vector.broadcast %cst_21 : f32 to vector<8x1xf32>
    %49 = arith.mulf %45, %48 : vector<8x1xf32>
    %50 = arith.mulf %47, %47 : vector<8x1xf32>
    %51 = arith.subf %49, %50 : vector<8x1xf32>
    %52 = vector.broadcast %47 : vector<8x1xf32> to vector<8x128xf32>
    %53 = arith.subf %38, %52 : vector<8x128xf32>
    %cst_22 = arith.constant 9.99999974E-6 : f32
    %54 = vector.broadcast %cst_22 : f32 to vector<8x1xf32>
    %55 = arith.addf %51, %54 : vector<8x1xf32>
    %56 = math.rsqrt %55 : vector<8x1xf32>
    %57 = vector.broadcast %56 : vector<8x1xf32> to vector<8x128xf32>
    %58 = arith.mulf %53, %57 : vector<8x128xf32>
    %59 = vector.broadcast %39 : vector<1x128xf32> to vector<8x128xf32>
    %60 = arith.mulf %58, %59 : vector<8x128xf32>
    %61 = vector.broadcast %40 : vector<1x128xf32> to vector<8x128xf32>
    %62 = arith.addf %60, %61 : vector<8x128xf32>
    %cst_23 = arith.constant 0.000000e+00 : f32
    %63 = vector.broadcast %cst_23 : f32 to vector<8x128xf32>
    %64 = arith.maximumf %62, %63 : vector<8x128xf32>
    %c144 = arith.constant 144 : index
    %c0_24 = arith.constant 0 : index
    %65 = vector.load %arg1[%c144, %c0_24] : memref<528x128xbf16, #tpu.memory_space<vmem>>, vector<128x128xbf16>
    %66 = arith.truncf %64 : vector<8x128xf32> to vector<8x128xbf16>
    %cst_25 = arith.constant dense<0.000000e+00> : vector<8x128xf32>
    %67 = tpu.matmul %66, %65, %cst_25 {dimension_numbers = #tpu.dot_dimension_numbers<[1], [0], [0], [1], [0, 0, 1, 1], [], []>} : vector<8x128xbf16>, vector<128x128xbf16>, vector<8x128xf32> -> vector<8x128xf32>
    %c16_26 = arith.constant 16 : index
    %c0_27 = arith.constant 0 : index
    %68 = vector.load %arg2[%c16_26, %c0_27] : memref<40x128xf32, #tpu.memory_space<vmem>>, vector<1x128xf32>
    %69 = vector.broadcast %68 : vector<1x128xf32> to vector<8x128xf32>
    %70 = arith.addf %67, %69 : vector<8x128xf32>
    %c17 = arith.constant 17 : index
    %c0_28 = arith.constant 0 : index
    %71 = vector.load %arg2[%c17, %c0_28] : memref<40x128xf32, #tpu.memory_space<vmem>>, vector<1x128xf32>
    %c18 = arith.constant 18 : index
    %c0_29 = arith.constant 0 : index
    %72 = vector.load %arg2[%c18, %c0_29] : memref<40x128xf32, #tpu.memory_space<vmem>>, vector<1x128xf32>
    %cst_30 = arith.constant dense<0.000000e+00> : vector<8xf32>
    %73 = vector.multi_reduction <add>, %70, %cst_30 [1] : vector<8x128xf32> to vector<8xf32>
    %74 = vector.shape_cast %73 : vector<8xf32> to vector<8x1xf32>
    %75 = arith.mulf %70, %70 : vector<8x128xf32>
    %cst_31 = arith.constant dense<0.000000e+00> : vector<8xf32>
    %76 = vector.multi_reduction <add>, %75, %cst_31 [1] : vector<8x128xf32> to vector<8xf32>
    %77 = vector.shape_cast %76 : vector<8xf32> to vector<8x1xf32>
    %cst_32 = arith.constant 0.00999999977 : f32
    %78 = vector.broadcast %cst_32 : f32 to vector<8x1xf32>
    %79 = arith.mulf %74, %78 : vector<8x1xf32>
    %cst_33 = arith.constant 0.00999999977 : f32
    %80 = vector.broadcast %cst_33 : f32 to vector<8x1xf32>
    %81 = arith.mulf %77, %80 : vector<8x1xf32>
    %82 = arith.mulf %79, %79 : vector<8x1xf32>
    %83 = arith.subf %81, %82 : vector<8x1xf32>
    %84 = vector.broadcast %79 : vector<8x1xf32> to vector<8x128xf32>
    %85 = arith.subf %70, %84 : vector<8x128xf32>
    %cst_34 = arith.constant 9.99999974E-6 : f32
    %86 = vector.broadcast %cst_34 : f32 to vector<8x1xf32>
    %87 = arith.addf %83, %86 : vector<8x1xf32>
    %88 = math.rsqrt %87 : vector<8x1xf32>
    %89 = vector.broadcast %88 : vector<8x1xf32> to vector<8x128xf32>
    %90 = arith.mulf %85, %89 : vector<8x128xf32>
    %91 = vector.broadcast %71 : vector<1x128xf32> to vector<8x128xf32>
    %92 = arith.mulf %90, %91 : vector<8x128xf32>
    %93 = vector.broadcast %72 : vector<1x128xf32> to vector<8x128xf32>
    %94 = arith.addf %92, %93 : vector<8x128xf32>
    %cst_35 = arith.constant 0.000000e+00 : f32
    %95 = vector.broadcast %cst_35 : f32 to vector<8x128xf32>
    %96 = arith.maximumf %94, %95 : vector<8x128xf32>
    %c272 = arith.constant 272 : index
    %c0_36 = arith.constant 0 : index
    %97 = vector.load %arg1[%c272, %c0_36] : memref<528x128xbf16, #tpu.memory_space<vmem>>, vector<128x128xbf16>
    %98 = arith.truncf %96 : vector<8x128xf32> to vector<8x128xbf16>
    %cst_37 = arith.constant dense<0.000000e+00> : vector<8x128xf32>
    %99 = tpu.matmul %98, %97, %cst_37 {dimension_numbers = #tpu.dot_dimension_numbers<[1], [0], [0], [1], [0, 0, 1, 1], [], []>} : vector<8x128xbf16>, vector<128x128xbf16>, vector<8x128xf32> -> vector<8x128xf32>
    %c24 = arith.constant 24 : index
    %c0_38 = arith.constant 0 : index
    %100 = vector.load %arg2[%c24, %c0_38] : memref<40x128xf32, #tpu.memory_space<vmem>>, vector<1x128xf32>
    %101 = vector.broadcast %100 : vector<1x128xf32> to vector<8x128xf32>
    %102 = arith.addf %99, %101 : vector<8x128xf32>
    %c25 = arith.constant 25 : index
    %c0_39 = arith.constant 0 : index
    %103 = vector.load %arg2[%c25, %c0_39] : memref<40x128xf32, #tpu.memory_space<vmem>>, vector<1x128xf32>
    %c26 = arith.constant 26 : index
    %c0_40 = arith.constant 0 : index
    %104 = vector.load %arg2[%c26, %c0_40] : memref<40x128xf32, #tpu.memory_space<vmem>>, vector<1x128xf32>
    %cst_41 = arith.constant dense<0.000000e+00> : vector<8xf32>
    %105 = vector.multi_reduction <add>, %102, %cst_41 [1] : vector<8x128xf32> to vector<8xf32>
    %106 = vector.shape_cast %105 : vector<8xf32> to vector<8x1xf32>
    %107 = arith.mulf %102, %102 : vector<8x128xf32>
    %cst_42 = arith.constant dense<0.000000e+00> : vector<8xf32>
    %108 = vector.multi_reduction <add>, %107, %cst_42 [1] : vector<8x128xf32> to vector<8xf32>
    %109 = vector.shape_cast %108 : vector<8xf32> to vector<8x1xf32>
    %cst_43 = arith.constant 2.000000e-02 : f32
    %110 = vector.broadcast %cst_43 : f32 to vector<8x1xf32>
    %111 = arith.mulf %106, %110 : vector<8x1xf32>
    %cst_44 = arith.constant 2.000000e-02 : f32
    %112 = vector.broadcast %cst_44 : f32 to vector<8x1xf32>
    %113 = arith.mulf %109, %112 : vector<8x1xf32>
    %114 = arith.mulf %111, %111 : vector<8x1xf32>
    %115 = arith.subf %113, %114 : vector<8x1xf32>
    %116 = vector.broadcast %111 : vector<8x1xf32> to vector<8x128xf32>
    %117 = arith.subf %102, %116 : vector<8x128xf32>
    %cst_45 = arith.constant 9.99999974E-6 : f32
    %118 = vector.broadcast %cst_45 : f32 to vector<8x1xf32>
    %119 = arith.addf %115, %118 : vector<8x1xf32>
    %120 = math.rsqrt %119 : vector<8x1xf32>
    %121 = vector.broadcast %120 : vector<8x1xf32> to vector<8x128xf32>
    %122 = arith.mulf %117, %121 : vector<8x128xf32>
    %123 = vector.broadcast %103 : vector<1x128xf32> to vector<8x128xf32>
    %124 = arith.mulf %122, %123 : vector<8x128xf32>
    %125 = vector.broadcast %104 : vector<1x128xf32> to vector<8x128xf32>
    %126 = arith.addf %124, %125 : vector<8x128xf32>
    %cst_46 = arith.constant 0.000000e+00 : f32
    %127 = vector.broadcast %cst_46 : f32 to vector<8x128xf32>
    %128 = arith.maximumf %126, %127 : vector<8x128xf32>
    %c400 = arith.constant 400 : index
    %c0_47 = arith.constant 0 : index
    %129 = vector.load %arg1[%c400, %c0_47] : memref<528x128xbf16, #tpu.memory_space<vmem>>, vector<128x128xbf16>
    %130 = arith.truncf %128 : vector<8x128xf32> to vector<8x128xbf16>
    %cst_48 = arith.constant dense<0.000000e+00> : vector<8x128xf32>
    %131 = tpu.matmul %130, %129, %cst_48 {dimension_numbers = #tpu.dot_dimension_numbers<[1], [0], [0], [1], [0, 0, 1, 1], [], []>} : vector<8x128xbf16>, vector<128x128xbf16>, vector<8x128xf32> -> vector<8x128xf32>
    %c32 = arith.constant 32 : index
    %c0_49 = arith.constant 0 : index
    %132 = vector.load %arg2[%c32, %c0_49] : memref<40x128xf32, #tpu.memory_space<vmem>>, vector<1x128xf32>
    %133 = vector.broadcast %132 : vector<1x128xf32> to vector<8x128xf32>
    %134 = arith.addf %131, %133 : vector<8x128xf32>
    %c33 = arith.constant 33 : index
    %c0_50 = arith.constant 0 : index
    %135 = vector.load %arg2[%c33, %c0_50] : memref<40x128xf32, #tpu.memory_space<vmem>>, vector<1x128xf32>
    %c34 = arith.constant 34 : index
    %c0_51 = arith.constant 0 : index
    %136 = vector.load %arg2[%c34, %c0_51] : memref<40x128xf32, #tpu.memory_space<vmem>>, vector<1x128xf32>
    %cst_52 = arith.constant dense<0.000000e+00> : vector<8xf32>
    %137 = vector.multi_reduction <add>, %134, %cst_52 [1] : vector<8x128xf32> to vector<8xf32>
    %138 = vector.shape_cast %137 : vector<8xf32> to vector<8x1xf32>
    %139 = arith.mulf %134, %134 : vector<8x128xf32>
    %cst_53 = arith.constant dense<0.000000e+00> : vector<8xf32>
    %140 = vector.multi_reduction <add>, %139, %cst_53 [1] : vector<8x128xf32> to vector<8xf32>
    %141 = vector.shape_cast %140 : vector<8xf32> to vector<8x1xf32>
    %cst_54 = arith.constant 2.500000e-01 : f32
    %142 = vector.broadcast %cst_54 : f32 to vector<8x1xf32>
    %143 = arith.mulf %138, %142 : vector<8x1xf32>
    %cst_55 = arith.constant 2.500000e-01 : f32
    %144 = vector.broadcast %cst_55 : f32 to vector<8x1xf32>
    %145 = arith.mulf %141, %144 : vector<8x1xf32>
    %146 = arith.mulf %143, %143 : vector<8x1xf32>
    %147 = arith.subf %145, %146 : vector<8x1xf32>
    %148 = vector.broadcast %143 : vector<8x1xf32> to vector<8x128xf32>
    %149 = arith.subf %134, %148 : vector<8x128xf32>
    %cst_56 = arith.constant 9.99999974E-6 : f32
    %150 = vector.broadcast %cst_56 : f32 to vector<8x1xf32>
    %151 = arith.addf %147, %150 : vector<8x1xf32>
    %152 = math.rsqrt %151 : vector<8x1xf32>
    %153 = vector.broadcast %152 : vector<8x1xf32> to vector<8x128xf32>
    %154 = arith.mulf %149, %153 : vector<8x128xf32>
    %155 = vector.broadcast %135 : vector<1x128xf32> to vector<8x128xf32>
    %156 = arith.mulf %154, %155 : vector<8x128xf32>
    %157 = vector.broadcast %136 : vector<1x128xf32> to vector<8x128xf32>
    %158 = arith.addf %156, %157 : vector<8x128xf32>
    %159 = math.tanh %158 : vector<8x128xf32>
    %c0_57 = arith.constant 0 : index
    %c0_58 = arith.constant 0 : index
    %160 = vector.load %arg3[%c0_57, %c0_58] : memref<8x128xf32, #tpu.memory_space<vmem>>, vector<8x128xf32>
    tpu.vector_store %arg3[%c0_57, %c0_58], %159 {strides = array<i32>} : memref<8x128xf32, #tpu.memory_space<vmem>>, vector<8x128xf32>,
    return
  }
}

</mosaic_0001>

<bundles_post_ra>
// kernel: actor_forward.1
= control target key start
LH: loop header
LB: loop body
LE: loop exit
PB: predicated region body
PF: predicated region fallthrough
CT: control target
= control target key end

     0   :  { %8 = vsyncpa [#allocation3], 0  ;;  %s876_s0 = inlined_call_operand.hbm [shape: f32[8,16], index: 0, kind: input, shape index: {}]   ;;  %s877_s1 = inlined_call_operand.hbm [shape: bf16[528,128], index: 1, kind: input, shape index: {}]   ;;  %s878_s2 = inlined_call_operand.hbm [shape: f32[40,128], index: 2, kind: input, shape index: {}]   ;;  %s879_s3 = inlined_call_operand.vmem [shape: f32[8,128], index: 3, kind: output, shape index: {}]  }
   0x1   :  { %9 = vsyncpa [#allocation5], 0  ;;  %s25_s14 = sshll.u32 %s877_s1, 4  ;;  %s837_s15 = smov [#allocation4]   ;;  %s26_s14 = int_to_ptr.hbm [resolvable:$true] %s25_s14 }
   0x2   :  { %s27_s16 = sshll.u32 %s837_s15, 4  ;;  %s15_s19 = sshll.u32 %s876_s0, 4  ;;  %s28_s16 = int_to_ptr.vmem [resolvable:$true] %s27_s16  ;;  %s16_s19 = int_to_ptr.hbm [resolvable:$true] %s15_s19 }
   0x3   :  { %s838_s20 = smov 64   ;;  %s839_s21 = smov 4  }
   0x4   :  { %33 = dma.hbm_to_vmem [thread:$0]  %s26_s14, 4224, %s28_s16, [#allocation5], %s838_s20, %s838_s20, %s839_s21  }
   0x5   :  { %s840_s22 = smov [#allocation2]   ;;  %s38_s26 = sshll.u32 %s878_s2, 4  ;;  %s39_s26 = int_to_ptr.hbm [resolvable:$true] %s38_s26 }
   0x6   :  { %s17_s23 = sshll.u32 %s840_s22, 4  ;;  %s841_s1 = smov [#allocation6]   ;;  %s18_s23 = int_to_ptr.vmem [resolvable:$true] %s17_s23 }
   0x7   :  { %20 = dma.hbm_to_vmem [thread:$0]  %s16_s19, 128, %s18_s23, [#allocation3]  }
   0x8   :  { %s40_s27 = sshll.u32 %s841_s1, 4  ;;  %s842_s28 = smov 128   ;;  %s41_s27 = int_to_ptr.vmem [resolvable:$true] %s40_s27 }
   0x9   :  { %s843_s29 = smov 8  }
   0xa   :  { %46 = dma.hbm_to_vmem [thread:$0]  %s39_s26, 640, %s41_s27, [#allocation5], %s842_s28, %s842_s28, %s843_s29  }
   0xb   :  { %833 = dma.done.wait [#allocation3], 128  }
   0xc   :  { %834 = vsyncadd [#allocation3], 4294967168 }
   0xd   :  { %835 = dma.done.wait [#allocation5], 4864  }
   0xe   :  { %836 = vsyncadd [#allocation5], 4294962432  ;;  %v694_v0 = vld [vmem:[#allocation4] sm:$0xff]  ;;  %v60_v1 = vld [vmem:[#allocation2] sm:$0xff]  ;;  %vm72_vm0 = vcmask 130048  }
   0xf   :  { %v63_v2 = vpack.c.bf16 %v60_v1, %v60_v1  ;;  %83 = vmatpush.bf16.msra.mxu0 %v694_v0  ;;  %v734_v3 = vld [vmem:[#allocation6] ss:$0 sm:$0xff]  ;;  %v702_v8 = vld [vmem:[#allocation4 + $0x40] sm:$0xff]  ;;  %v701_v9 = vld [vmem:[#allocation4 + $0x38] sm:$0xff] }
  0x10   :  { %185 = vmatpush.bf16.msra.mxu1 %v702_v8  ;;  %v700_v10 = vld [vmem:[#allocation4 + $0x30] sm:$0xff]  ;;  %v699_v11 = vld [vmem:[#allocation4 + $0x28] sm:$0xff]  ;;  %v698_v12 = vld [vmem:[#allocation4 + $0x20] sm:$0xff] }
  0x11   :  { %v697_v13 = vld [vmem:[#allocation4 + $0x18] sm:$0xff]  ;;  %v696_v15 = vld [vmem:[#allocation4 + $0x10] sm:$0xff]  ;;  %v695_v16 = vld [vmem:[#allocation4 + $0x8] sm:$0xff] }
  0x12   :  { %565 = vmatmul.msk.bf16.vlgmr.msra.gmra.mxu0 %vm72_vm0, %v63_v2  ;;  %v735_v30 = vld [vmem:[#allocation6 + $0x1] ss:$0 sm:$0xff]  ;;  %v736_v33 = vld [vmem:[#allocation6 + $0x2] ss:$0 sm:$0xff]  ;;  %v737_v38 = vld [vmem:[#allocation6 + $0x8] ss:$0 sm:$0xff] }
  0x13   :  { %v710_v43 = vld [vmem:[#allocation4 + $0x80] sm:$0xff]  ;;  %v709_v44 = vld [vmem:[#allocation4 + $0x78] sm:$0xff]  ;;  %v708_v45 = vld [vmem:[#allocation4 + $0x70] sm:$0xff] }
  0x14   :  { %186 = vmatpush.bf16.msra.mxu1 %v701_v9  ;;  %294 = vmatpush.bf16.msra.mxu2 %v710_v43  ;;  %v707_v46 = vld [vmem:[#allocation4 + $0x68] sm:$0xff]  ;;  %v706_v47 = vld [vmem:[#allocation4 + $0x60] sm:$0xff]  ;;  %v705_v48 = vld [vmem:[#allocation4 + $0x58] sm:$0xff] }
  0x15   :  { %v704_v50 = vld [vmem:[#allocation4 + $0x50] sm:$0xff]  ;;  %v703_v51 = vld [vmem:[#allocation4 + $0x48] sm:$0xff]  ;;  %v740_v9 = vld [vmem:[#allocation6 + $0x10] ss:$0 sm:$0xff] }
  0x16   :  { %v738_v1 = vld [vmem:[#allocation6 + $0x9] ss:$0 sm:$0xff] }
  0x18   :  { %187 = vmatpush.bf16.msra.mxu1 %v700_v10  ;;  %295 = vmatpush.bf16.msra.mxu2 %v709_v44  ;;  %v743_v44 = vld [vmem:[#allocation6 + $0x18] ss:$0 sm:$0xff] }
  0x1c   :  { %188 = vmatpush.bf16.msra.mxu1 %v699_v11  ;;  %296 = vmatpush.bf16.msra.mxu2 %v708_v45 }
  0x20   :  { %189 = vmatpush.bf16.msra.mxu1 %v698_v12  ;;  %297 = vmatpush.bf16.msra.mxu2 %v707_v46 }
  0x24   :  { %190 = vmatpush.bf16.msra.mxu1 %v697_v13  ;;  %298 = vmatpush.bf16.msra.mxu2 %v706_v47 }
  0x28   :  { %191 = vmatpush.bf16.msra.mxu1 %v696_v15  ;;  %299 = vmatpush.bf16.msra.mxu2 %v705_v48  ;;  %v717_v15 = vld [vmem:[#allocation4 + $0xb8] sm:$0xff] }
  0x2c   :  { %192 = vmatpush.bf16.msra.mxu1 %v695_v16  ;;  %300 = vmatpush.bf16.msra.mxu2 %v704_v50  ;;  %v716_v16 = vld [vmem:[#allocation4 + $0xb0] sm:$0xff]  ;;  %v725_v50 = vld [vmem:[#allocation4 + $0xf8] sm:$0xff] }
  0x30   :  { %301 = vmatpush.bf16.msra.mxu2 %v703_v51  ;;  %v724_v51 = vld [vmem:[#allocation4 + $0xf0] sm:$0xff] }
  0x8f   :  { %v85_v4 = vpop.f32.mrf.mxu0 }
  0x90   :  { %v86_v5 = vadd.f32 %v734_v3, %v85_v4  ;;  %v739_v4 = vld [vmem:[#allocation6 + $0xa] ss:$0 sm:$0xff] }
  0x92   :  { %91 = vadd.xlane.f32.xlu0 %v86_v5  ;;  %v93_v7 = vmul.f32 %v86_v5, %v86_v5 }
  0x97   :  { %v87_v6 = vpop.f32.mrf.mxu0 }
  0x9a   :  { %94 = vadd.xlane.f32.xlu0 %v93_v7 }
 0x105   :  { %v92_v14 = vpop.xlane.xlu0 %91 }
 0x106   :  { %v96_v17 = vmul.f32 0.02, %v92_v14  ;;  %v718_v14 = vld [vmem:[#allocation4 + $0xc0] sm:$0xff] }
 0x107   :  { %403 = vmatpush.bf16.msra.mxu3 %v718_v14 }
 0x108   :  { %v98_v19 = vmul.f32 %v96_v17, %v96_v17  ;;  %v100_v29 = vsub.f32 %v86_v5, %v96_v17  ;;  %v715_v17 = vld [vmem:[#allocation4 + $0xa8] sm:$0xff] }
 0x10b   :  { %404 = vmatpush.bf16.msra.mxu3 %v717_v15  ;;  %v746_v15 = vld [vmem:[#allocation6 + $0x20] ss:$0 sm:$0xff] }
 0x10d   :  { %v95_v18 = vpop.xlane.xlu0 %94 }
 0x10e   :  { %v97_v20 = vmul.f32 0.02, %v95_v18  ;;  %v714_v18 = vld [vmem:[#allocation4 + $0xa0] sm:$0xff] }
 0x10f   :  { %405 = vmatpush.bf16.msra.mxu3 %v716_v16 }
 0x110   :  { %v99_v21 = vsub.f32 %v97_v20, %v98_v19  ;;  %v713_v19 = vld [vmem:[#allocation4 + $0x98] sm:$0xff] }
 0x112   :  { %v101_v22 = vadd.f32 1e-05, %v99_v21  ;;  %v712_v21 = vld [vmem:[#allocation4 + $0x90] sm:$0xff] }
 0x113   :  { %406 = vmatpush.bf16.msra.mxu3 %v715_v17 }
 0x114   :  { %749 = vrsqrt.f32 %v101_v22  ;;  %vm108_vm2 = vweird.f32 %v101_v22 }
 0x117   :  { %407 = vmatpush.bf16.msra.mxu3 %v714_v18 }
 0x11a   :  { %v750_v23 = vpop.eup %749 }
 0x11b   :  { %v103_v24 = vmul.f32 %v750_v23, %v101_v22  ;;  %vm109_vm1 = vweird.f32 %v750_v23  ;;  %408 = vmatpush.bf16.msra.mxu3 %v713_v19  ;;  %v711_v22 = vld [vmem:[#allocation4 + $0x88] sm:$0xff] }
 0x11c   :  { %vm110_vm3 = vmor %vm108_vm2, %vm109_vm1 }
 0x11d   :  { %v104_v25 = vmul.f32 %v750_v23, %v103_v24 }
 0x11f   :  { %v105_v26 = vmul.f32 0.5, %v104_v25  ;;  %409 = vmatpush.bf16.msra.mxu3 %v712_v21 }
 0x121   :  { %v106_v27 = vsub.f32 1.5, %v105_v26 }
 0x123   :  { %v107_v28 = vmul.f32 %v750_v23, %v106_v27  ;;  %410 = vmatpush.bf16.msra.mxu3 %v711_v22 }
 0x125   :  { %v111_v31 = vsel %vm110_vm3, %v750_v23, %v107_v28 }
 0x126   :  { %v112_v32 = vmul.f32 %v111_v31, %v100_v29 }
 0x128   :  { %v114_v34 = vmul.f32 %v735_v30, %v112_v32 }
 0x12a   :  { %v116_v35 = vadd.f32 %v736_v33, %v114_v34 }
 0x12c   :  { %v117_v36 = vmax.f32 %v116_v35, 0.0 }
 0x12e   :  { %v134_v37 = vpack.c.bf16 %v117_v36, %v117_v36  ;;  %v741_v36 = vld [vmem:[#allocation6 + $0x11] ss:$0 sm:$0xff] }
 0x130   :  { %193 = vmatmul.bf16.vlgmr.msra.gmra.mxu1 %v134_v37 }
 0x1ad   :  { %v194_v39 = vpop.f32.mrf.mxu1 }
 0x1ae   :  { %v195_v40 = vadd.f32 %v737_v38, %v194_v39  ;;  %v742_v39 = vld [vmem:[#allocation6 + $0x12] ss:$0 sm:$0xff] }
 0x1b0   :  { %200 = vadd.xlane.f32.xlu1 %v195_v40  ;;  %v202_v42 = vmul.f32 %v195_v40, %v195_v40 }
 0x1b5   :  { %v196_v41 = vpop.f32.mrf.mxu1 }
 0x1b8   :  { %203 = vadd.xlane.f32.xlu1 %v202_v42 }
 0x223   :  { %v201_v49 = vpop.xlane.xlu1 %200 }
 0x224   :  { %v205_v52 = vmul.f32 0.01, %v201_v49  ;;  %v726_v49 = vld [vmem:[#allocation4 + $0x100] sm:$0xff] }
 0x225   :  { %512 = vmatpush.bf16.msrb.mxu0 %v726_v49 }
 0x226   :  { %v207_v54 = vmul.f32 %v205_v52, %v205_v52  ;;  %v209_v0 = vsub.f32 %v195_v40, %v205_v52  ;;  %v723_v52 = vld [vmem:[#allocation4 + $0xe8] sm:$0xff] }
 0x229   :  { %513 = vmatpush.bf16.msrb.mxu0 %v725_v50 }
 0x22b   :  { %v204_v53 = vpop.xlane.xlu1 %203 }
 0x22c   :  { %v206_v55 = vmul.f32 0.01, %v204_v53  ;;  %v722_v53 = vld [vmem:[#allocation4 + $0xe0] sm:$0xff] }
 0x22d   :  { %514 = vmatpush.bf16.msrb.mxu0 %v724_v51 }
 0x22e   :  { %v208_v56 = vsub.f32 %v206_v55, %v207_v54  ;;  %v721_v54 = vld [vmem:[#allocation4 + $0xd8] sm:$0xff]  ;;  %v720_v55 = vld [vmem:[#allocation4 + $0xd0] sm:$0xff] }
 0x230   :  { %v210_v57 = vadd.f32 1e-05, %v208_v56  ;;  %v719_v56 = vld [vmem:[#allocation4 + $0xc8] sm:$0xff] }
 0x231   :  { %515 = vmatpush.bf16.msrb.mxu0 %v723_v52 }
 0x232   :  { %751 = vrsqrt.f32 %v210_v57  ;;  %vm217_vm5 = vweird.f32 %v210_v57 }
 0x235   :  { %516 = vmatpush.bf16.msrb.mxu0 %v722_v53 }
 0x238   :  { %v752_v58 = vpop.eup %751 }
 0x239   :  { %v212_v59 = vmul.f32 %v752_v58, %v210_v57  ;;  %vm218_vm4 = vweird.f32 %v752_v58  ;;  %517 = vmatpush.bf16.msrb.mxu0 %v721_v54 }
 0x23a   :  { %vm219_vm6 = vmor %vm217_vm5, %vm218_vm4 }
 0x23b   :  { %v213_v60 = vmul.f32 %v752_v58, %v212_v59 }
 0x23d   :  { %v214_v61 = vmul.f32 0.5, %v213_v60  ;;  %518 = vmatpush.bf16.msrb.mxu0 %v720_v55 }
 0x23f   :  { %v215_v62 = vsub.f32 1.5, %v214_v61 }
 0x241   :  { %v216_v63 = vmul.f32 %v752_v58, %v215_v62  ;;  %519 = vmatpush.bf16.msrb.mxu0 %v719_v56 }
 0x243   :  { %v220_v2 = vsel %vm219_vm6, %v752_v58, %v216_v63 }
 0x244   :  { %v221_v3 = vmul.f32 %v220_v2, %v209_v0 }
 0x246   :  { %v223_v5 = vmul.f32 %v738_v1, %v221_v3 }
 0x248   :  { %v225_v6 = vadd.f32 %v739_v4, %v223_v5 }
 0x24a   :  { %v226_v7 = vmax.f32 %v225_v6, 0.0 }
 0x24c   :  { %v243_v8 = vpack.c.bf16 %v226_v7, %v226_v7  ;;  %v744_v7 = vld [vmem:[#allocation6 + $0x19] ss:$0 sm:$0xff] }
 0x24e   :  { %302 = vmatmul.bf16.vlgmr.msra.gmra.mxu2 %v243_v8 }
 0x2d1   :  { %v303_v10 = vpop.f32.mrf.mxu2 }
 0x2d2   :  { %v304_v11 = vadd.f32 %v740_v9, %v303_v10  ;;  %v745_v10 = vld [vmem:[#allocation6 + $0x1a] ss:$0 sm:$0xff] }
 0x2d4   :  { %309 = vadd.xlane.f32.xlu2 %v304_v11  ;;  %v311_v13 = vmul.f32 %v304_v11, %v304_v11 }
 0x2d9   :  { %v305_v12 = vpop.f32.mrf.mxu2 }
 0x2dc   :  { %312 = vadd.xlane.f32.xlu2 %v311_v13 }
 0x347   :  { %v310_v20 = vpop.xlane.xlu2 %309 }
 0x348   :  { %v314_v23 = vmul.f32 0.01, %v310_v20 }
 0x34a   :  { %v316_v25 = vmul.f32 %v314_v23, %v314_v23  ;;  %v318_v35 = vsub.f32 %v304_v11, %v314_v23 }
 0x34f   :  { %v313_v24 = vpop.xlane.xlu2 %312 }
 0x350   :  { %v315_v26 = vmul.f32 0.01, %v313_v24 }
 0x352   :  { %v317_v27 = vsub.f32 %v315_v26, %v316_v25 }
 0x354   :  { %v319_v28 = vadd.f32 1e-05, %v317_v27 }
 0x356   :  { %753 = vrsqrt.f32 %v319_v28  ;;  %vm326_vm8 = vweird.f32 %v319_v28 }
 0x35c   :  { %v754_v29 = vpop.eup %753 }
 0x35d   :  { %v321_v30 = vmul.f32 %v754_v29, %v319_v28  ;;  %vm327_vm7 = vweird.f32 %v754_v29 }
 0x35e   :  { %vm328_vm9 = vmor %vm326_vm8, %vm327_vm7 }
 0x35f   :  { %v322_v31 = vmul.f32 %v754_v29, %v321_v30 }
 0x361   :  { %v323_v32 = vmul.f32 0.5, %v322_v31 }
 0x363   :  { %v324_v33 = vsub.f32 1.5, %v323_v32 }
 0x365   :  { %v325_v34 = vmul.f32 %v754_v29, %v324_v33 }
 0x367   :  { %v329_v37 = vsel %vm328_vm9, %v754_v29, %v325_v34  ;;  %v747_v34 = vld [vmem:[#allocation6 + $0x21] ss:$0 sm:$0xff] }
 0x368   :  { %v330_v38 = vmul.f32 %v329_v37, %v318_v35 }
 0x36a   :  { %v332_v40 = vmul.f32 %v741_v36, %v330_v38  ;;  %v748_v36 = vld [vmem:[#allocation6 + $0x22] ss:$0 sm:$0xff] }
 0x36c   :  { %v334_v41 = vadd.f32 %v742_v39, %v332_v40 }
 0x36e   :  { %v335_v42 = vmax.f32 %v334_v41, 0.0 }
 0x370   :  { %v352_v43 = vpack.c.bf16 %v335_v42, %v335_v42 }
 0x372   :  { %411 = vmatmul.bf16.vlgmr.msra.gmra.mxu3 %v352_v43 }
 0x3f5   :  { %v412_v45 = vpop.f32.mrf.mxu3 }
 0x3f6   :  { %v413_v46 = vadd.f32 %v743_v44, %v412_v45 }
 0x3f8   :  { %418 = vadd.xlane.f32.xlu0 %v413_v46  ;;  %v420_v47 = vmul.f32 %v413_v46, %v413_v46 }
 0x3fa   :  { %421 = vadd.xlane.f32.xlu1 %v420_v47 }
 0x3fd   :  { %v414_v48 = vpop.f32.mrf.mxu3 }
 0x46b   :  { %v419_v57 = vpop.xlane.xlu0 %418 }
 0x46c   :  { %v423_v58 = vmul.f32 0.02, %v419_v57 }
 0x46d   :  { %v422_v59 = vpop.xlane.xlu1 %421 }
 0x46e   :  { %v425_v60 = vmul.f32 %v423_v58, %v423_v58  ;;  %v424_v61 = vmul.f32 0.02, %v422_v59  ;;  %v427_v6 = vsub.f32 %v413_v46, %v423_v58 }
 0x470   :  { %v426_v62 = vsub.f32 %v424_v61, %v425_v60 }
 0x472   :  { %v428_v63 = vadd.f32 1e-05, %v426_v62 }
 0x474   :  { %755 = vrsqrt.f32 %v428_v63  ;;  %vm435_vm11 = vweird.f32 %v428_v63 }
 0x47a   :  { %v756_v0 = vpop.eup %755 }
 0x47b   :  { %v430_v1 = vmul.f32 %v756_v0, %v428_v63  ;;  %vm436_vm10 = vweird.f32 %v756_v0 }
 0x47c   :  { %vm437_vm12 = vmor %vm435_vm11, %vm436_vm10 }
 0x47d   :  { %v431_v2 = vmul.f32 %v756_v0, %v430_v1 }
 0x47f   :  { %v432_v3 = vmul.f32 0.5, %v431_v2 }
 0x481   :  { %v433_v4 = vsub.f32 1.5, %v432_v3 }
 0x483   :  { %v434_v5 = vmul.f32 %v756_v0, %v433_v4 }
 0x485   :  { %v438_v8 = vsel %vm437_vm12, %v756_v0, %v434_v5 }
 0x486   :  { %v439_v9 = vmul.f32 %v438_v8, %v427_v6 }
 0x488   :  { %v441_v11 = vmul.f32 %v744_v7, %v439_v9 }
 0x48a   :  { %v443_v12 = vadd.f32 %v745_v10, %v441_v11 }
 0x48c   :  { %v444_v13 = vmax.f32 %v443_v12, 0.0 }
 0x48e   :  { %v461_v14 = vpack.c.bf16 %v444_v13, %v444_v13 }
 0x490   :  { %520 = vmatmul.bf16.vlgmr.msrb.gmra.mxu0 %v461_v14 }
 0x50d   :  { %v521_v16 = vpop.f32.mrf.mxu0 }
 0x50e   :  { %v522_v17 = vadd.f32 %v746_v15, %v521_v16 }
 0x510   :  { %527 = vadd.xlane.f32.xlu2 %v522_v17  ;;  %v529_v18 = vmul.f32 %v522_v17, %v522_v17 }
 0x512   :  { %530 = vadd.xlane.f32.xlu0 %v529_v18 }
 0x515   :  { %v523_v19 = vpop.f32.mrf.mxu0 }
 0x583   :  { %v528_v20 = vpop.xlane.xlu2 %527 }
 0x584   :  { %v532_v21 = vmul.f32 0.25, %v528_v20 }
 0x585   :  { %v531_v22 = vpop.xlane.xlu0 %530 }
 0x586   :  { %v534_v23 = vmul.f32 %v532_v21, %v532_v21  ;;  %v533_v24 = vmul.f32 0.25, %v531_v22  ;;  %v536_v33 = vsub.f32 %v522_v17, %v532_v21 }
 0x588   :  { %v535_v25 = vsub.f32 %v533_v24, %v534_v23 }
 0x58a   :  { %v537_v26 = vadd.f32 1e-05, %v535_v25 }
 0x58c   :  { %757 = vrsqrt.f32 %v537_v26  ;;  %vm544_vm14 = vweird.f32 %v537_v26 }
 0x592   :  { %v758_v27 = vpop.eup %757 }
 0x593   :  { %v539_v28 = vmul.f32 %v758_v27, %v537_v26  ;;  %vm545_vm13 = vweird.f32 %v758_v27 }
 0x594   :  { %vm546_vm15 = vmor %vm544_vm14, %vm545_vm13 }
 0x595   :  { %v540_v29 = vmul.f32 %v758_v27, %v539_v28 }
 0x597   :  { %v541_v30 = vmul.f32 0.5, %v540_v29 }
 0x599   :  { %v542_v31 = vsub.f32 1.5, %v541_v30 }
 0x59b   :  { %v543_v32 = vmul.f32 %v758_v27, %v542_v31 }
 0x59d   :  { %v547_v35 = vsel %vm546_vm15, %v758_v27, %v543_v32 }
 0x59e   :  { %v548_v37 = vmul.f32 %v547_v35, %v536_v33 }
 0x5a0   :  { %v550_v38 = vmul.f32 %v747_v34, %v548_v37 }
 0x5a2   :  { %v552_v39 = vadd.f32 %v748_v36, %v550_v38 }
 0x5a4   :  { %759 = vtanh.f32 %v552_v39 }
 0x5aa   :  { %v760_v40 = vpop.eup %759 }
 0x5ab   :  { %554 = vst [vmem:[%s879_s3] sm:$0xff] %v760_v40 }
 0x5ac   :  { %559 = vsyncpa [#allocation3], 1 }
 0x5ad   :  { %560 = vsyncpa [#allocation5], 1 }

</bundles_post_ra>
